<compile_context>
chip_gen: v7x
topology: tpu7x:2x2x1
jax: 0.10.0
libtpu: 0.0.40
codegen_flags: <defaults>
</compile_context>

<pallas_src>
import functools

import jax
import jax.numpy as jnp
from jax.experimental import pallas as pl
from jax.experimental.pallas import tpu as pltpu


# --------------------------------------------------------------------------------------
# VMEM budgeting (per TPU generation)
# --------------------------------------------------------------------------------------
def _round_up(n, m):
    return ((n + m - 1) // m) * m


@functools.lru_cache(maxsize=None)
def _vmem_budget():
    """Returns (usable_bytes_for_blocks, vmem_limit_bytes) for this chip."""
    try:
        cap = int(pltpu.get_tpu_info().vmem_capacity_bytes)
    except Exception:
        cap = 64 * 1024 * 1024  # conservative fallback (v7x-sized VMEM)
    limit = max(cap // 2, 32 * 1024 * 1024)        # scoped VMEM we ask for
    usable = max(limit - (4 << 20), 16 << 20)      # headroom for Mosaic internals
    return usable, limit


def _choose_rows_tiles(R, S, itemsize, usable):
    """(block_r, block_s) for the (R, S) lane-reduction kernel, sized to VMEM."""
    s_pad = _round_up(S, 128)
    out_pad = 128                                   # (block_r, 2) pads lanes to 128
    per_row = 2 * (s_pad + out_pad) * itemsize      # in + out, double buffered
    max_rows = max(int(usable // per_row), 1)
    if max_rows >= R:
        return R, S                                 # whole array in one block
    if max_rows >= 8:
        return (max_rows // 8) * 8, S               # full-S rows, tile R
    # Huge spatial extent: minimal row block, tile S (accumulator path).
    block_r = R if R < 8 else 8
    br8 = _round_up(block_r, 8)
    fixed = 2 * br8 * out_pad * itemsize + 2 * br8 * 128 * 4   # out bufs + f32 accs
    per_lane = 2 * br8 * itemsize
    block_s = max(128, (int(max(usable - fixed, 0) // per_lane) // 128) * 128)
    if block_s >= S:
        return block_r, S
    return block_r, block_s


def _choose_nhwc_tiles(B, S, C, itemsize, usable):
    """(block_b, block_s) for the (B, S, C) sublane-reduction kernel, sized to VMEM."""
    c_pad = _round_up(C, 128)
    out_pad = _round_up(2 * C, 128)

    def footprint(bb, bs):
        bb8 = _round_up(bb, 8)
        in_b = bb * _round_up(bs, 8) * c_pad * itemsize
        out_b = bb8 * out_pad * itemsize
        acc = 2 * bb8 * c_pad * 4
        return 2 * (in_b + out_b) + acc

    if footprint(B, S) <= usable:
        return B, S
    if B >= 8:
        per_b = 2 * (_round_up(S, 8) * c_pad + out_pad) * itemsize + 2 * c_pad * 4
        bb = (int(usable // per_b) // 8) * 8
        if bb >= 8:
            return min(bb, (B // 8) * 8), S
    # Tile the spatial axis (accumulator path).
    bb = B if B < 8 else 8
    bb8 = _round_up(bb, 8)
    fixed = 2 * bb8 * out_pad * itemsize + 2 * bb8 * c_pad * 4
    per_s = 2 * bb * c_pad * itemsize
    if usable > fixed:
        block_s = max(8, (int((usable - fixed) // per_s) // 8) * 8)
    else:
        block_s = 8
    if block_s >= S:
        return bb, S
    return bb, block_s


# --------------------------------------------------------------------------------------
# Kernels
# --------------------------------------------------------------------------------------
def _pool_rows_kernel(x_ref, out_ref, *acc, true_s, need_mask):
    """Global avg+max over the last (lane) axis of an (R, S) view.

    out block: (block_r, 2) -- column 0 = avg, column 1 = max.
    If `acc` is non-empty it holds (sum_acc, max_acc) f32 scratch and the S axis is
    tiled over grid axis 1; otherwise the full spatial extent is in one block.
    """
    x = x_ref[...].astype(jnp.float32)              # (block_r, block_s)

    if not acc:                                     # single pass: block_s == true_s
        inv = jnp.float32(1.0 / true_s)
        out_ref[:, 0:1] = (jnp.sum(x, axis=-1, keepdims=True) * inv).astype(out_ref.dtype)
        out_ref[:, 1:2] = jnp.max(x, axis=-1, keepdims=True).astype(out_ref.dtype)
        return

    sum_acc, max_acc = acc
    k = pl.program_id(1)
    nk = pl.num_programs(1)

    @pl.when(k == 0)
    def _init():
        sum_acc[...] = jnp.zeros_like(sum_acc)
        max_acc[...] = jnp.full_like(max_acc, -jnp.inf)

    if need_mask:
        lane = jax.lax.broadcasted_iota(jnp.int32, x.shape, 1) + k * x.shape[-1]
        valid = lane < true_s
        xs = jnp.where(valid, x, 0.0)
        xm = jnp.where(valid, x, -jnp.inf)
    else:
        xs = xm = x

    sum_acc[...] += jnp.sum(xs, axis=-1, keepdims=True)
    max_acc[...] = jnp.maximum(max_acc[...], jnp.max(xm, axis=-1, keepdims=True))

    @pl.when(k == nk - 1)
    def _finalize():
        inv = jnp.float32(1.0 / true_s)             # divide by the TRUE spatial size
        out_ref[:, 0:1] = (sum_acc[...] * inv).astype(out_ref.dtype)
        out_ref[:, 1:2] = max_acc[...].astype(out_ref.dtype)


def _pool_nhwc_kernel(x_ref, out_ref, *acc, true_s, need_mask):
    """Global avg+max over the spatial (sublane) axis of a (B, S, C) view.

    out block: (block_b, 2*C) -- [:, :C] = avg, [:, C:] = max (lane-dense, C on lanes).
    """
    x = x_ref[...].astype(jnp.float32)              # (block_b, block_s, C)
    C = x.shape[-1]

    if not acc:                                     # single pass: block_s == true_s
        inv = jnp.float32(1.0 / true_s)
        out_ref[:, :C] = (jnp.sum(x, axis=1) * inv).astype(out_ref.dtype)
        out_ref[:, C:] = jnp.max(x, axis=1).astype(out_ref.dtype)
        return

    sum_acc, max_acc = acc
    k = pl.program_id(1)
    nk = pl.num_programs(1)

    @pl.when(k == 0)
    def _init():
        sum_acc[...] = jnp.zeros_like(sum_acc)
        max_acc[...] = jnp.full_like(max_acc, -jnp.inf)

    if need_mask:
        srow = jax.lax.broadcasted_iota(jnp.int32, x.shape, 1) + k * x.shape[1]
        valid = srow < true_s
        xs = jnp.where(valid, x, 0.0)
        xm = jnp.where(valid, x, -jnp.inf)
    else:
        xs = xm = x

    sum_acc[...] += jnp.sum(xs, axis=1)
    max_acc[...] = jnp.maximum(max_acc[...], jnp.max(xm, axis=1))

    @pl.when(k == nk - 1)
    def _finalize():
        inv = jnp.float32(1.0 / true_s)
        out_ref[:, :C] = (sum_acc[...] * inv).astype(out_ref.dtype)
        out_ref[:, C:] = max_acc[...].astype(out_ref.dtype)


# --------------------------------------------------------------------------------------
# pallas_call wrappers
# --------------------------------------------------------------------------------------
@functools.partial(jax.jit, static_argnames=("block_r", "block_s", "need_mask", "vmem_limit"))
def _pool_rows(x2d, *, block_r, block_s, need_mask, vmem_limit):
    """x2d: (R, S) -> (R, 2) with [:, 0]=mean, [:, 1]=max over S."""
    R, S = x2d.shape
    kernel = functools.partial(_pool_rows_kernel, true_s=S, need_mask=need_mask)
    if block_s < S:      # spatial axis tiled -> accumulator path
        grid = (pl.cdiv(R, block_r), pl.cdiv(S, block_s))
        in_specs = [pl.BlockSpec((block_r, block_s), lambda i, k: (i, k))]
        out_specs = pl.BlockSpec((block_r, 2), lambda i, k: (i, 0))
        scratch = [pltpu.VMEM((block_r, 1), jnp.float32),
                   pltpu.VMEM((block_r, 1), jnp.float32)]
        dims = ("parallel", "arbitrary")
    else:                # whole spatial extent per block -> direct reduce
        grid = (pl.cdiv(R, block_r),)
        in_specs = [pl.BlockSpec((block_r, S), lambda i: (i, 0))]
        out_specs = pl.BlockSpec((block_r, 2), lambda i: (i, 0))
        scratch = []
        dims = ("parallel",)
    return pl.pallas_call(
        kernel,
        out_shape=jax.ShapeDtypeStruct((R, 2), x2d.dtype),
        grid=grid,
        in_specs=in_specs,
        out_specs=out_specs,
        scratch_shapes=scratch,
        compiler_params=pltpu.CompilerParams(
            dimension_semantics=dims, vmem_limit_bytes=vmem_limit),
    )(x2d)


@functools.partial(jax.jit, static_argnames=("block_b", "block_s", "need_mask", "vmem_limit"))
def _pool_nhwc(x3, *, block_b, block_s, need_mask, vmem_limit):
    """x3: (B, S, C) -> (B, 2C) with [:, :C]=mean, [:, C:]=max over S (native layout)."""
    B, S, C = x3.shape
    kernel = functools.partial(_pool_nhwc_kernel, true_s=S, need_mask=need_mask)
    if block_s < S:
        grid = (pl.cdiv(B, block_b), pl.cdiv(S, block_s))
        in_specs = [pl.BlockSpec((block_b, block_s, C), lambda i, k: (i, k, 0))]
        out_specs = pl.BlockSpec((block_b, 2 * C), lambda i, k: (i, 0))
        scratch = [pltpu.VMEM((block_b, C), jnp.float32),
                   pltpu.VMEM((block_b, C), jnp.float32)]
        dims = ("parallel", "arbitrary")
    else:
        grid = (pl.cdiv(B, block_b),)
        in_specs = [pl.BlockSpec((block_b, S, C), lambda i: (i, 0, 0))]
        out_specs = pl.BlockSpec((block_b, 2 * C), lambda i: (i, 0))
        scratch = []
        dims = ("parallel",)
    return pl.pallas_call(
        kernel,
        out_shape=jax.ShapeDtypeStruct((B, 2 * C), x3.dtype),
        grid=grid,
        in_specs=in_specs,
        out_specs=out_specs,
        scratch_shapes=scratch,
        compiler_params=pltpu.CompilerParams(
            dimension_semantics=dims, vmem_limit_bytes=vmem_limit),
    )(x3)


# --------------------------------------------------------------------------------------
# Public wrapper (SelectAdaptivePool2d.forward equivalent)
# --------------------------------------------------------------------------------------
def select_adaptive_pool2d(x, pool_type="fast", flatten=False, input_fmt="NCHW"):
    """JAX/Pallas equivalent of SelectAdaptivePool2d.forward (output_size == 1).

    Supports '', 'fast', 'fastavg', 'fastmax', 'fastavgmax', 'fastcatavgmax' and the
    standard 'avg'/'max'/'avgmax'/'catavgmax' (identical to fast variants at 1x1).
    """
    assert input_fmt in ("NCHW", "NHWC"), f"Invalid input format: {input_fmt}"
    pool_type = pool_type or ""

    if not pool_type:  # identity path
        return x.reshape(x.shape[0], -1) if flatten else x

    # TODO(synk): general output_size > 1 (true adaptive pooling windows) is not
    # implemented; only the global (output_size == 1) case is handled, which matches
    # the module default and all 'fast*' / non-NCHW paths.

    itemsize = jnp.dtype(x.dtype).itemsize
    usable, vmem_limit = _vmem_budget()

    if input_fmt == "NHWC":
        B, H, W, C = x.shape
        S = H * W
        x3 = x.reshape(B, S, C)                      # free view -- no HBM transpose
        block_b, block_s = _choose_nhwc_tiles(B, S, C, itemsize, usable)
        need_mask = (block_s < S) and (S % block_s != 0)
        out2 = _pool_nhwc(x3, block_b=block_b, block_s=block_s,
                          need_mask=need_mask, vmem_limit=vmem_limit)
        avg = out2[:, :C]
        mx = out2[:, C:]
    else:
        B, C, H, W = x.shape
        S = H * W
        R = B * C
        x2 = x.reshape(R, S)
        block_r, block_s = _choose_rows_tiles(R, S, itemsize, usable)
        need_mask = (block_s < S) and (S % block_s != 0)
        out2 = _pool_rows(x2, block_r=block_r, block_s=block_s,
                          need_mask=need_mask, vmem_limit=vmem_limit)
        avg = out2[:, 0].reshape(B, C)
        mx = out2[:, 1].reshape(B, C)

    base = pool_type[4:] if pool_type.startswith("fast") else pool_type
    if base == "catavgmax":
        flat = jnp.concatenate([avg, mx], axis=1)    # (B, 2C)
    elif base == "avgmax":
        flat = 0.5 * avg + 0.5 * mx                  # (B, C)
    elif base == "max":
        flat = mx
    else:                                            # 'avg' / 'fast' default
        flat = avg

    if flatten:
        return flat
    Cout = flat.shape[1]
    if input_fmt == "NHWC":
        return flat.reshape(B, 1, 1, Cout)           # keepdim over spatial dims (1, 2)
    return flat.reshape(B, Cout, 1, 1)               # keepdim over spatial dims (2, 3)


# --------------------------------------------------------------------------------------
# Reference + self-test
# --------------------------------------------------------------------------------------
def _reference(x, pool_type="fast", flatten=False, input_fmt="NCHW"):
    pool_type = pool_type or ""
    if not pool_type:
        return x.reshape(x.shape[0], -1) if flatten else x
    red = (1, 2) if input_fmt == "NHWC" else (2, 3)
    cdim = 3 if input_fmt == "NHWC" else 1
    avg = jnp.mean(x, axis=red, keepdims=not flatten)
    mx = jnp.max(x, axis=red, keepdims=not flatten)
    base = pool_type[4:] if pool_type.startswith("fast") else pool_type
    if base == "catavgmax":
        return jnp.concatenate([avg, mx], axis=1 if flatten else cdim)
    if base == "avgmax":
        return 0.5 * avg + 0.5 * mx
    if base == "max":
        return mx
    return avg


def _close(a, b):
    return a.shape == b.shape and bool(jnp.allclose(a, b, atol=1e-5, rtol=1e-5))


if __name__ == "__main__":
    key = jax.random.PRNGKey(0)
    B, C, H, W = 2, 4, 16, 16
    x = jax.random.normal(key, (B, C, H, W), dtype=jnp.float32)

    # Default module config: pool_type='fast', flatten=False, input_fmt='NCHW'.
    out = select_adaptive_pool2d(x, pool_type="fast", flatten=False, input_fmt="NCHW")
    jax.block_until_ready(out)
    ok = out.shape == (B, C, 1, 1)

    for pt in ("fast", "fastavg", "fastmax", "fastavgmax", "fastcatavgmax", "avg", "max"):
        for fl in (False, True):
            got = select_adaptive_pool2d(x, pool_type=pt, flatten=fl, input_fmt="NCHW")
            ref = _reference(x, pool_type=pt, flatten=fl, input_fmt="NCHW")
            jax.block_until_ready(got)
            ok = ok and _close(got, ref)

    # NHWC (native-layout kernel, no transpose).
    x_nhwc = jnp.transpose(x, (0, 2, 3, 1))
    got = select_adaptive_pool2d(x_nhwc, pool_type="fastcatavgmax", flatten=False, input_fmt="NHWC")
    ref = _reference(x_nhwc, pool_type="fastcatavgmax", flatten=False, input_fmt="NHWC")
    jax.block_until_ready(got)
    ok = ok and _close(got, ref)

    # Forced spatial tiling / masking paths (accumulator kernels), checked directly.
    lim = 64 * 1024 * 1024
    xr = jax.random.normal(jax.random.PRNGKey(1), (16, 300), dtype=jnp.float32)
    got = _pool_rows(xr, block_r=8, block_s=128, need_mask=True, vmem_limit=lim)
    jax.block_until_ready(got)
    ok = ok and _close(got[:, 0], jnp.mean(xr, axis=-1)) and _close(got[:, 1], jnp.max(xr, axis=-1))

    xr2 = jax.random.normal(jax.random.PRNGKey(3), (16, 256), dtype=jnp.float32)
    got = _pool_rows(xr2, block_r=8, block_s=128, need_mask=False, vmem_limit=lim)
    jax.block_until_ready(got)
    ok = ok and _close(got[:, 0], jnp.mean(xr2, axis=-1)) and _close(got[:, 1], jnp.max(xr2, axis=-1))

    xn = jax.random.normal(jax.random.PRNGKey(2), (2, 20, 8), dtype=jnp.float32)
    got = _pool_nhwc(xn, block_b=2, block_s=8, need_mask=True, vmem_limit=lim)
    jax.block_until_ready(got)
    ok = ok and _close(got[:, :8], jnp.mean(xn, axis=1)) and _close(got[:, 8:], jnp.max(xn, axis=1))

    if ok:
        print("KERNEL_OK")
    else:
        print("KERNEL_MISMATCH")
</pallas_src>

<mosaic_0001>
module attributes {stable_mosaic.version = 11 : i64} {
  func.func @_pool_rows_kernel(%arg0: i32, %arg1: memref<8x256xf32, #tpu.memory_space<vmem>>, %arg2: memref<8x2xf32, #tpu.memory_space<vmem>>) attributes {dimension_semantics = [#tpu.dimension_semantics<parallel>], iteration_bounds = array<i64: 1>, scalar_prefetch = 0 : i64, scratch_operands = 0 : i64, tpu.core_type = #tpu.core_type<tc>, window_params = [{transform_indices = @transform_0, window_bounds = array<i64: 8, 256>}, {transform_indices = @transform_1, window_bounds = array<i64: 8, 2>}]} {
    %c0 = arith.constant 0 : index
    %c0_0 = arith.constant 0 : index
    %0 = vector.load %arg1[%c0, %c0_0] : memref<8x256xf32, #tpu.memory_space<vmem>>, vector<8x256xf32>
    %cst = arith.constant dense<0.000000e+00> : vector<8xf32>
    %1 = vector.multi_reduction <add>, %0, %cst [1] : vector<8x256xf32> to vector<8xf32>
    %2 = vector.shape_cast %1 : vector<8xf32> to vector<8x1xf32>
    %cst_1 = arith.constant 3.906250e-03 : f32
    %3 = vector.broadcast %cst_1 : f32 to vector<8x1xf32>
    %4 = arith.mulf %2, %3 : vector<8x1xf32>
    %c0_2 = arith.constant 0 : index
    %c0_3 = arith.constant 0 : index
    %5 = vector.load %arg2[%c0_2, %c0_3] : memref<8x2xf32, #tpu.memory_space<vmem>>, vector<8x1xf32>
    tpu.vector_store %arg2[%c0_2, %c0_3], %4 {strides = array<i32>} : memref<8x2xf32, #tpu.memory_space<vmem>>, vector<8x1xf32>,
    %cst_4 = arith.constant dense<0xFF800000> : vector<8xf32>
    %6 = vector.multi_reduction <maximumf>, %0, %cst_4 [1] : vector<8x256xf32> to vector<8xf32>
    %7 = vector.shape_cast %6 : vector<8xf32> to vector<8x1xf32>
    %c0_5 = arith.constant 0 : index
    %c1 = arith.constant 1 : index
    %8 = vector.load %arg2[%c0_5, %c1] : memref<8x2xf32, #tpu.memory_space<vmem>>, vector<8x1xf32>
    tpu.vector_store %arg2[%c0_5, %c1], %7 {strides = array<i32>} : memref<8x2xf32, #tpu.memory_space<vmem>>, vector<8x1xf32>,
    return
  }
  func.func @transform_0(%arg0: i32) -> (i32, i32) {
    %c0_i32 = arith.constant 0 : i32
    %c0_i32_0 = arith.constant 0 : i32
    return %arg0, %c0_i32 : i32, i32
  }
  func.func @transform_1(%arg0: i32) -> (i32, i32) {
    %c0_i32 = arith.constant 0 : i32
    %c0_i32_0 = arith.constant 0 : i32
    return %arg0, %c0_i32 : i32, i32
  }
}

</mosaic_0001>

<bundles_post_ra>
// kernel: _pool_rows.1
= control target key start
LH: loop header
LB: loop body
LE: loop exit
PB: predicated region body
PF: predicated region fallthrough
CT: control target
= control target key end

     0   :  { %6 = vsyncpa [#allocation3], 0  ;;  %s63_s6 = smov [#allocation2]   ;;  %s92_s0 = inlined_call_operand.hbm [shape: f32[8,256], index: 0, kind: input, shape index: {}]   ;;  %s93_s1 = inlined_call_operand.vmem [shape: f32[8,2], index: 1, kind: output, shape index: {}]  }
   0x1   :  { %s13_s7 = sshll.u32 %s63_s6, 4  ;;  %s39_s10 = scalar_lea.hbm %s92_s0, 256  ;;  %s14_s7 = int_to_ptr.vmem [resolvable:$true] %s13_s7 }
   0x2   :  { %p40_p0 = scmp.ne.s32.totalorder %s92_s0, %s39_s10  ;;  %p43_p1 = scmp.lt.u32.totalorder %s39_s10, %s92_s0 }
   0x4   :  { %p45_p2 = pnand %p43_p1, %p40_p0 }
   0x6   :  { %48 = shalt.err (!%p45_p2)
}
   0x7   :  { %s49_s15 = scalar_lea.vmem %s14_s7, 256  ;;  %p54_p4 = scmp.lt.s32.totalorder %s14_s7, %s14_s7 }
   0x8   :  { %p50_p3 = scmp.ne.s32.totalorder %s14_s7, %s49_s15  ;;  %p55_p5 = scmp.lt.s32.totalorder %s49_s15, %s49_s15 }
   0xa   :  { %p56_p6 = por %p55_p5, %p54_p4 }
   0xc   :  { %p57_p7 = pnand %p56_p6, %p50_p3 }
   0xe   :  { %60 = shalt.err (!%p57_p7)
}
   0xf   :  { %16 = dma.hbm_to_vmem [thread:$0]  %s92_s0, 256, %s14_s7, [#allocation3]  }
  0x10   :  { %61 = dma.done.wait [#allocation3], 256  }
  0x11   :  { %62 = vsyncadd [#allocation3], 4294967040  ;;  %v20_v0 = vld [vmem:[#allocation2] sm:$0xff]  ;;  %v21_v1 = vld [vmem:[#allocation2 + $0x8] sm:$0xff]  ;;  %vm26_vm0 = vcmask 7168   ;;  %vm31_vm1 = vcmask 15368  }
  0x12   :  { %v22_v2 = vadd.f32 %v21_v1, %v20_v0  ;;  %v28_v3 = vmax.f32 %v20_v0, %v21_v1 }
  0x14   :  { %23 = vadd.xlane.f32.xlu0 %v22_v2 }
  0x18   :  { %29 = vmax.xlane.f32.xlu0 %v28_v3 }
  0xa1   :  { %v24_v4 = vpop.xlane.xlu0 %23 }
  0xa2   :  { %v25_v5 = vmul.f32 0.00390625, %v24_v4 }
  0xa4   :  { %27 = vst.msk [vmem:[%s93_s1] sm:$0xff] %vm26_vm0, %v25_v5 }
  0xa5   :  { %v30_v6 = vpop.xlane.xlu0 %29 }
  0xa6   :  { %32 = vst.msk [vmem:[%s93_s1] sm:$0xff] %vm31_vm1, %v30_v6 }
  0xa7   :  { %37 = vsyncpa [#allocation3], 1 }

</bundles_post_ra>
